<compile_context>
chip_gen: v5e
topology: v5e:2x2
jax: 0.10.0
libtpu: 0.0.40
codegen_flags: <defaults>
</compile_context>

<pallas_src>
import jax
import jax.numpy as jnp
from jax.experimental import pallas as pl
from jax.experimental.pallas import tpu as pltpu

LANE = 128  # lane width for the hidden (inner) dims


def _round_up(x, m):
    return (x + m - 1) // m * m


def make_mlp_kernel(num_layers):
    """Fused MLP kernel: (num_layers - 1) x (Linear+ReLU) then Linear+Sigmoid.
    Layer loop is statically unrolled; matmuls in bf16, accumulate/epilogue f32."""

    def kernel(*refs):
        # refs = (x, w0, b0, w1, b1, ..., w_last, b_last, out)
        x_ref = refs[0]
        o_ref = refs[-1]
        p_refs = refs[1:-1]

        h = x_ref[...].astype(jnp.bfloat16)   # f32 HBM stream, bf16 in regs
        for i in range(num_layers):
            w = p_refs[2 * i][...]            # bf16 [K_i, N_i]
            b = p_refs[2 * i + 1][...]        # f32  [1,   N_i]
            acc = jnp.dot(h, w, preferred_element_type=jnp.float32) + b
            if i < num_layers - 1:
                h = jnp.maximum(acc, 0.0).astype(jnp.bfloat16)  # ReLU (VPU)
            else:
                h = jax.nn.sigmoid(acc)                          # sigmoid (EUP)
        o_ref[...] = h.astype(o_ref.dtype)

    return kernel


def init_params(key, input_size, hidden_sizes, output_size):
    """Deterministic parameter init (uniform, PyTorch-Linear-like bounds).
    Logical (unpadded) f32 weights stored as [in, out], biases as [1, out]."""
    params = []
    dims = [input_size] + list(hidden_sizes) + [output_size]
    for i in range(len(dims) - 1):
        d_in, d_out = dims[i], dims[i + 1]
        key, kw, kb = jax.random.split(key, 3)
        bound = 1.0 / (d_in ** 0.5)
        w = jax.random.uniform(kw, (d_in, d_out), jnp.float32, -bound, bound)
        b = jax.random.uniform(kb, (1, d_out), jnp.float32, -bound, bound)
        params.append((w, b))
    return params


def prepare_params(params):
    """Pad weights/biases for the kernel:
      * layer 0 keeps K = in_size (matches the unpadded input stream),
      * hidden layers pad N (and later K) to LANE multiples with zeros,
      * the last layer keeps N = out_size (no wasted output lanes).
    Weights are cast to bf16; biases stay f32 for the f32 epilogue."""
    prepped = []
    n = len(params)
    for i, (w, b) in enumerate(params):
        k_in = w.shape[0] if i == 0 else _round_up(w.shape[0], LANE)
        n_out = w.shape[1] if i == n - 1 else _round_up(w.shape[1], LANE)
        wp = jnp.zeros((k_in, n_out), jnp.bfloat16)
        wp = wp.at[: w.shape[0], : w.shape[1]].set(w.astype(jnp.bfloat16))
        bp = jnp.zeros((1, n_out), jnp.float32)
        bp = bp.at[:, : b.shape[-1]].set(b.reshape(1, -1))
        prepped.append((wp, bp))
    return prepped


def pdf_model_forward(x, params, prepped, *, batch_tile=2048):
    """Forward pass. `params` are the logical (unpadded) params (for shapes),
    `prepped` are the kernel-padded bf16/f32 params."""
    batch, in_size = x.shape
    out_size = params[-1][0].shape[1]
    num_layers = len(prepped)

    # Batch tile: large (amortizes per-step overhead), multiple of 16 (bf16
    # sublane pack), and <= ceil(batch/2) so the parallel axis has >= 2 steps
    # when the batch allows it (uses both v7x TensorCores).
    half = -(-batch // 2)
    bt = min(batch_tile, _round_up(max(half, 16), 16))
    batch_p = _round_up(batch, bt)

    # Only pad batch rows when needed (no lane padding, no dtype cast pass).
    x_in = x if batch_p == batch else jnp.pad(x, ((0, batch_p - batch), (0, 0)))

    flat_args = [x_in]
    for w, b in prepped:
        flat_args.extend([w, b])

    # Activations: tiled along batch, auto double-buffered by BlockSpec.
    in_specs = [pl.BlockSpec((bt, in_size), lambda i: (i, 0))]
    # Weights/biases: full-array blocks with a constant index_map -> VMEM
    # resident, never re-DMA'd across grid steps.
    for w, b in prepped:
        in_specs.append(pl.BlockSpec(w.shape, lambda i: (0, 0)))
        in_specs.append(pl.BlockSpec(b.shape, lambda i: (0, 0)))
    out_specs = pl.BlockSpec((bt, out_size), lambda i: (i, 0))

    flops = 2 * batch_p * sum(int(w.shape[0]) * int(w.shape[1]) for w, _ in prepped)
    transcendentals = batch_p * out_size
    bytes_accessed = (
        batch_p * in_size * 4
        + sum(int(w.size) * 2 + int(b.size) * 4 for w, b in prepped)
        + batch_p * out_size * 4
    )

    out_full = pl.pallas_call(
        make_mlp_kernel(num_layers),
        out_shape=jax.ShapeDtypeStruct((batch_p, out_size), jnp.float32),
        grid=(batch_p // bt,),
        in_specs=in_specs,
        out_specs=out_specs,
        compiler_params=pltpu.CompilerParams(
            dimension_semantics=("parallel",),   # megacore sharding on v7x
        ),
        cost_estimate=pl.CostEstimate(
            flops=flops,
            transcendentals=transcendentals,
            bytes_accessed=bytes_accessed,
        ),
    )(*flat_args)

    return out_full if batch_p == batch else out_full[:batch]


def pdf_model_ref(x, params):
    """Pure-JAX reference mirroring the kernel's precision choices:
    bf16 matmul operands, f32 accumulation, f32 epilogue."""
    h = x.astype(jnp.bfloat16)
    n = len(params)
    for i, (w, b) in enumerate(params):
        acc = jnp.dot(h, w.astype(jnp.bfloat16),
                      preferred_element_type=jnp.float32) + b.reshape(1, -1)
        if i < n - 1:
            h = jnp.maximum(acc, 0.0).astype(jnp.bfloat16)
        else:
            h = jax.nn.sigmoid(acc)
    return h


if __name__ == "__main__":
    # Small shapes consistent with the module:
    #   input_size=32, hidden_sizes=[64, 32], output_size=16, batch=8
    input_size = 32
    hidden_sizes = [64, 32]
    output_size = 16
    batch = 8

    key = jax.random.PRNGKey(0)
    key, kx = jax.random.split(key)
    x = jax.random.normal(kx, (batch, input_size), jnp.float32)

    params = init_params(key, input_size, hidden_sizes, output_size)
    prepped = prepare_params(params)

    out = pdf_model_forward(x, params, prepped)
    out = jax.block_until_ready(out)

    ref = pdf_model_ref(x, params)
    assert out.shape == (batch, output_size), out.shape
    assert jnp.allclose(out, ref, atol=1e-4, rtol=1e-4), "mismatch vs reference"

    print("KERNEL_OK")
</pallas_src>

<mosaic_0001>
module attributes {stable_mosaic.version = 11 : i64} {
  func.func @kernel(%arg0: i32, %arg1: memref<16x32xf32, #tpu.memory_space<vmem>>, %arg2: memref<32x128xbf16, #tpu.memory_space<vmem>>, %arg3: memref<1x128xf32, #tpu.memory_space<vmem>>, %arg4: memref<128x128xbf16, #tpu.memory_space<vmem>>, %arg5: memref<1x128xf32, #tpu.memory_space<vmem>>, %arg6: memref<128x16xbf16, #tpu.memory_space<vmem>>, %arg7: memref<1x16xf32, #tpu.memory_space<vmem>>, %arg8: memref<16x16xf32, #tpu.memory_space<vmem>>) attributes {dimension_semantics = [#tpu.dimension_semantics<parallel>], iteration_bounds = array<i64: 1>, scalar_prefetch = 0 : i64, scratch_operands = 0 : i64, tpu.core_type = #tpu.core_type<tc>, window_params = [{transform_indices = @transform_0, window_bounds = array<i64: 16, 32>}, {pipeline_mode = #tpu.pipeline_mode<synchronous>, transform_indices = @transform_1, window_bounds = array<i64: 32, 128>}, {pipeline_mode = #tpu.pipeline_mode<synchronous>, transform_indices = @transform_2, window_bounds = array<i64: 1, 128>}, {pipeline_mode = #tpu.pipeline_mode<synchronous>, transform_indices = @transform_3, window_bounds = array<i64: 128, 128>}, {pipeline_mode = #tpu.pipeline_mode<synchronous>, transform_indices = @transform_4, window_bounds = array<i64: 1, 128>}, {pipeline_mode = #tpu.pipeline_mode<synchronous>, transform_indices = @transform_5, window_bounds = array<i64: 128, 16>}, {pipeline_mode = #tpu.pipeline_mode<synchronous>, transform_indices = @transform_6, window_bounds = array<i64: 1, 16>}, {transform_indices = @transform_7, window_bounds = array<i64: 16, 16>}]} {
    %c0 = arith.constant 0 : index
    %c0_0 = arith.constant 0 : index
    %0 = vector.load %arg1[%c0, %c0_0] : memref<16x32xf32, #tpu.memory_space<vmem>>, vector<16x32xf32>
    %1 = arith.truncf %0 : vector<16x32xf32> to vector<16x32xbf16>
    %c0_1 = arith.constant 0 : index
    %c0_2 = arith.constant 0 : index
    %2 = vector.load %arg2[%c0_1, %c0_2] : memref<32x128xbf16, #tpu.memory_space<vmem>>, vector<32x128xbf16>
    %c0_3 = arith.constant 0 : index
    %c0_4 = arith.constant 0 : index
    %3 = vector.load %arg3[%c0_3, %c0_4] : memref<1x128xf32, #tpu.memory_space<vmem>>, vector<1x128xf32>
    %cst = arith.constant dense<0.000000e+00> : vector<16x128xf32>
    %4 = tpu.matmul %1, %2, %cst {dimension_numbers = #tpu.dot_dimension_numbers<[1], [0], [0], [1], [0, 0, 1, 1], [], []>} : vector<16x32xbf16>, vector<32x128xbf16>, vector<16x128xf32> -> vector<16x128xf32>
    %5 = vector.broadcast %3 : vector<1x128xf32> to vector<16x128xf32>
    %6 = arith.addf %4, %5 : vector<16x128xf32>
    %cst_5 = arith.constant 0.000000e+00 : f32
    %7 = vector.broadcast %cst_5 : f32 to vector<16x128xf32>
    %8 = arith.maximumf %6, %7 : vector<16x128xf32>
    %9 = arith.truncf %8 : vector<16x128xf32> to vector<16x128xbf16>
    %c0_6 = arith.constant 0 : index
    %c0_7 = arith.constant 0 : index
    %10 = vector.load %arg4[%c0_6, %c0_7] : memref<128x128xbf16, #tpu.memory_space<vmem>>, vector<128x128xbf16>
    %c0_8 = arith.constant 0 : index
    %c0_9 = arith.constant 0 : index
    %11 = vector.load %arg5[%c0_8, %c0_9] : memref<1x128xf32, #tpu.memory_space<vmem>>, vector<1x128xf32>
    %cst_10 = arith.constant dense<0.000000e+00> : vector<16x128xf32>
    %12 = tpu.matmul %9, %10, %cst_10 {dimension_numbers = #tpu.dot_dimension_numbers<[1], [0], [0], [1], [0, 0, 1, 1], [], []>} : vector<16x128xbf16>, vector<128x128xbf16>, vector<16x128xf32> -> vector<16x128xf32>
    %13 = vector.broadcast %11 : vector<1x128xf32> to vector<16x128xf32>
    %14 = arith.addf %12, %13 : vector<16x128xf32>
    %cst_11 = arith.constant 0.000000e+00 : f32
    %15 = vector.broadcast %cst_11 : f32 to vector<16x128xf32>
    %16 = arith.maximumf %14, %15 : vector<16x128xf32>
    %17 = arith.truncf %16 : vector<16x128xf32> to vector<16x128xbf16>
    %c0_12 = arith.constant 0 : index
    %c0_13 = arith.constant 0 : index
    %18 = vector.load %arg6[%c0_12, %c0_13] : memref<128x16xbf16, #tpu.memory_space<vmem>>, vector<128x16xbf16>
    %c0_14 = arith.constant 0 : index
    %c0_15 = arith.constant 0 : index
    %19 = vector.load %arg7[%c0_14, %c0_15] : memref<1x16xf32, #tpu.memory_space<vmem>>, vector<1x16xf32>
    %cst_16 = arith.constant dense<0.000000e+00> : vector<16x16xf32>
    %20 = tpu.matmul %17, %18, %cst_16 {dimension_numbers = #tpu.dot_dimension_numbers<[1], [0], [0], [1], [0, 0, 1, 1], [], []>} : vector<16x128xbf16>, vector<128x16xbf16>, vector<16x16xf32> -> vector<16x16xf32>
    %21 = vector.broadcast %19 : vector<1x16xf32> to vector<16x16xf32>
    %22 = arith.addf %20, %21 : vector<16x16xf32>
    %23 = arith.negf %22 : vector<16x16xf32>
    %24 = math.exp %23 : vector<16x16xf32>
    %cst_17 = arith.constant 1.000000e+00 : f32
    %25 = vector.broadcast %cst_17 : f32 to vector<16x16xf32>
    %26 = arith.addf %25, %24 : vector<16x16xf32>
    %27 = arith.divf %25, %26 : vector<16x16xf32>
    %c0_18 = arith.constant 0 : index
    %c0_19 = arith.constant 0 : index
    %28 = vector.load %arg8[%c0_18, %c0_19] : memref<16x16xf32, #tpu.memory_space<vmem>>, vector<16x16xf32>
    tpu.vector_store %arg8[%c0_18, %c0_19], %27 {strides = array<i32>} : memref<16x16xf32, #tpu.memory_space<vmem>>, vector<16x16xf32>,
    return
  }
  func.func @transform_0(%arg0: i32) -> (i32, i32) {
    %c0_i32 = arith.constant 0 : i32
    %c0_i32_0 = arith.constant 0 : i32
    return %arg0, %c0_i32 : i32, i32
  }
  func.func @transform_1(%arg0: i32) -> (i32, i32) {
    %c0_i32 = arith.constant 0 : i32
    %c0_i32_0 = arith.constant 0 : i32
    %c0_i32_1 = arith.constant 0 : i32
    return %c0_i32, %c0_i32_0 : i32, i32
  }
  func.func @transform_2(%arg0: i32) -> (i32, i32) {
    %c0_i32 = arith.constant 0 : i32
    %c0_i32_0 = arith.constant 0 : i32
    %c0_i32_1 = arith.constant 0 : i32
    return %c0_i32, %c0_i32_0 : i32, i32
  }
  func.func @transform_3(%arg0: i32) -> (i32, i32) {
    %c0_i32 = arith.constant 0 : i32
    %c0_i32_0 = arith.constant 0 : i32
    %c0_i32_1 = arith.constant 0 : i32
    return %c0_i32, %c0_i32_0 : i32, i32
  }
  func.func @transform_4(%arg0: i32) -> (i32, i32) {
    %c0_i32 = arith.constant 0 : i32
    %c0_i32_0 = arith.constant 0 : i32
    %c0_i32_1 = arith.constant 0 : i32
    return %c0_i32, %c0_i32_0 : i32, i32
  }
  func.func @transform_5(%arg0: i32) -> (i32, i32) {
    %c0_i32 = arith.constant 0 : i32
    %c0_i32_0 = arith.constant 0 : i32
    %c0_i32_1 = arith.constant 0 : i32
    return %c0_i32, %c0_i32_0 : i32, i32
  }
  func.func @transform_6(%arg0: i32) -> (i32, i32) {
    %c0_i32 = arith.constant 0 : i32
    %c0_i32_0 = arith.constant 0 : i32
    %c0_i32_1 = arith.constant 0 : i32
    return %c0_i32, %c0_i32_0 : i32, i32
  }
  func.func @transform_7(%arg0: i32) -> (i32, i32) {
    %c0_i32 = arith.constant 0 : i32
    %c0_i32_0 = arith.constant 0 : i32
    return %arg0, %c0_i32 : i32, i32
  }
}

</mosaic_0001>

<bundles_post_ra>
// kernel: tpu_custom_call.1
= control target key start
LH: loop header
LB: loop body
LE: loop exit
PB: predicated region body
PF: predicated region fallthrough
CT: control target
= control target key end

     0   :  { %12 = vsyncpa [#allocation3], 0  ;;  %s642_s0 = inlined_call_operand.hbm [shape: f32[16,32], index: 0, kind: input, shape index: {}]   ;;  %s643_s1 = inlined_call_operand.hbm [shape: bf16[32,128], index: 1, kind: input, shape index: {}]   ;;  %s644_s2 = inlined_call_operand.vmem [shape: f32[1,128], index: 2, kind: input, shape index: {}]   ;;  %s645_s3 = inlined_call_operand.vmem [shape: bf16[128,128], index: 3, kind: input, shape index: {}]   ;;  %s646_s4 = inlined_call_operand.vmem [shape: f32[1,128], index: 4, kind: input, shape index: {}]   ;;  %s647_s5 = inlined_call_operand.vmem [shape: bf16[128,16], index: 5, kind: input, shape index: {}]   ;;  %s648_s6 = inlined_call_operand.vmem [shape: f32[1,16], index: 6, kind: input, shape index: {}]   ;;  %s649_s7 = inlined_call_operand.hbm [shape: f32[16,16], index: 7, kind: output, shape index: {}]  }
   0x1   :  { %13 = vsyncpa [#allocation6], 0 }
   0x2   :  { %14 = vsyncpa [#allocation4], 0  ;;  %s19_s26 = sshll.u32 %s642_s0, 4  ;;  %s521_s27 = smov [#allocation2]   ;;  %s20_s26 = int_to_ptr.hbm [resolvable:$true] %s19_s26 }
   0x3   :  { %s21_s28 = sshll.u32 %s521_s27, 4  ;;  %s32_s8 = sshll.u32 %s643_s1, 4  ;;  %s22_s28 = int_to_ptr.vmem [resolvable:$true] %s21_s28  ;;  %s33_s8 = int_to_ptr.hbm [resolvable:$true] %s32_s8 }
   0x4   :  { %s522_s9 = smov 128   ;;  %s523_s10 = smov 8  }
   0x5   :  { %27 = dma.hbm_to_vmem [thread:$0]  %s20_s26, 256, %s22_s28, [#allocation3], %s522_s9, %s522_s9, %s523_s10  }
   0x6   :  { %s524_s11 = smov [#allocation5]   ;;  %s525_s13 = smov 64  }
   0x7   :  { %s34_s12 = sshll.u32 %s524_s11, 4  ;;  %s526_s0 = smov 4   ;;  %s35_s12 = int_to_ptr.vmem [resolvable:$true] %s34_s12 }
   0x8   :  { %40 = dma.hbm_to_vmem [thread:$0]  %s33_s8, 256, %s35_s12, [#allocation6], %s525_s13, %s525_s13, %s526_s0  }
   0x9   :  { %515 = dma.done.wait [#allocation3], 256  }
   0xa   :  { %516 = vsyncadd [#allocation3], 4294967040 }
   0xb   :  { %517 = dma.done.wait [#allocation6], 256  }
   0xc   :  { %518 = vsyncadd [#allocation6], 4294967040  ;;  %v408_v0 = vld [vmem:[#allocation5 + $0x8] sm:$0xff]  ;;  %v407_v1 = vld [vmem:[#allocation5] sm:$0xff]  ;;  %vm83_vm0 = vcmask 261120   ;;  %vm309_vm4 = vcmask 130048  }
   0xd   :  { %v416_v2 = vld [vmem:[%s645_s3 + $0x38] sm:$0xff]  ;;  %93 = vmatpush.bf16.msra.mxu0 %v408_v0  ;;  %v60_v3 = vld [vmem:[#allocation2] sm:$0xff]  ;;  %v61_v4 = vld [vmem:[#allocation2 + $0x8] sm:$0xff]  ;;  %s318_s27 = sshll.u32 %s649_s7, 4  ;;  %s319_s27 = int_to_ptr.hbm [resolvable:$true] %s318_s27 }
   0xe   :  { %172 = vmatpush.bf16.msra.mxu1 %v416_v2  ;;  %v415_v5 = vld [vmem:[%s645_s3 + $0x30] sm:$0xff]  ;;  %v62_v6 = vpack.c.bf16 %v61_v4, %v60_v3  ;;  %v414_v7 = vld [vmem:[%s645_s3 + $0x28] sm:$0xff]  ;;  %v413_v8 = vld [vmem:[%s645_s3 + $0x20] sm:$0xff] }
   0xf   :  { %v412_v9 = vld [vmem:[%s645_s3 + $0x18] sm:$0xff]  ;;  %v411_v10 = vld [vmem:[%s645_s3 + $0x10] sm:$0xff]  ;;  %v410_v11 = vld [vmem:[%s645_s3 + $0x8] sm:$0xff] }
  0x10   :  { %v409_v12 = vld [vmem:[%s645_s3] sm:$0xff]  ;;  %v424_v13 = vld [vmem:[%s647_s5 + $0x38] sm:$0xff]  ;;  %v423_v14 = vld [vmem:[%s647_s5 + $0x30] sm:$0xff] }
  0x11   :  { %94 = vmatpush.bf16.msra.mxu0 %v407_v1  ;;  %257 = vmatpush.bf16.msra.mxu2 %v424_v13  ;;  %v422_v15 = vld [vmem:[%s647_s5 + $0x28] sm:$0xff]  ;;  %v421_v16 = vld [vmem:[%s647_s5 + $0x20] sm:$0xff]  ;;  %v420_v25 = vld [vmem:[%s647_s5 + $0x18] sm:$0xff] }
  0x12   :  { %173 = vmatpush.bf16.msra.mxu1 %v415_v5  ;;  %v432_v18 = vld [vmem:[%s644_s2] ss:$0 sm:$0xff]  ;;  %v419_v26 = vld [vmem:[%s647_s5 + $0x10] sm:$0xff]  ;;  %v418_v27 = vld [vmem:[%s647_s5 + $0x8] sm:$0xff] }
  0x13   :  { %v417_v28 = vld [vmem:[%s647_s5] sm:$0xff] }
  0x14   :  { %340 = vmatmul.msk.bf16.vlgmr.msra.gmra.mxu0 %vm83_vm0, %v62_v6  ;;  %v433_v30 = vld [vmem:[%s646_s4] ss:$0 sm:$0xff]  ;;  %s527_s4 = smov [#allocation7]  }
  0x15   :  { %258 = vmatpush.bf16.msra.mxu2 %v423_v14  ;;  %v434_v37 = vld [vmem:[%s648_s6] ss:$0 sm:$0xff]  ;;  %s316_s5 = sshll.u32 %s527_s4, 4  ;;  %s317_s5 = int_to_ptr.vmem [resolvable:$true] %s316_s5 }
  0x16   :  { %174 = vmatpush.bf16.msra.mxu1 %v414_v7 }
  0x19   :  { %259 = vmatpush.bf16.msra.mxu2 %v422_v15 }
  0x1a   :  { %175 = vmatpush.bf16.msra.mxu1 %v413_v8 }
  0x1d   :  { %260 = vmatpush.bf16.msra.mxu2 %v421_v16 }
  0x1e   :  { %176 = vmatpush.bf16.msra.mxu1 %v412_v9 }
  0x21   :  { %261 = vmatpush.bf16.msra.mxu2 %v420_v25 }
  0x22   :  { %177 = vmatpush.bf16.msra.mxu1 %v411_v10 }
  0x25   :  { %262 = vmatpush.bf16.msra.mxu2 %v419_v26 }
  0x26   :  { %178 = vmatpush.bf16.msra.mxu1 %v410_v11 }
  0x29   :  { %263 = vmatpush.bf16.msra.mxu2 %v418_v27 }
  0x2a   :  { %179 = vmatpush.bf16.msra.mxu1 %v409_v12 }
  0x2d   :  { %264 = vmatpush.bf16.msra.mxu2 %v417_v28 }
  0x91   :  { %v96_v17 = vpop.f32.mrf.mxu0 }
  0x92   :  { %v97_v19 = vadd.f32 %v432_v18, %v96_v17 }
  0x94   :  { %v101_v22 = vmax.f32 %v97_v19, 0.0 }
  0x99   :  { %v98_v20 = vpop.f32.mrf.mxu0 }
  0x9a   :  { %v99_v21 = vadd.f32 %v432_v18, %v98_v20 }
  0x9c   :  { %v102_v23 = vmax.f32 %v99_v21, 0.0 }
  0x9e   :  { %v103_v24 = vpack.c.bf16 %v102_v23, %v101_v22 }
  0xa0   :  { %180 = vmatmul.bf16.vlgmr.msra.gmra.mxu1 %v103_v24 }
 0x11d   :  { %v181_v29 = vpop.f32.mrf.mxu1 }
 0x11e   :  { %v182_v31 = vadd.f32 %v433_v30, %v181_v29 }
 0x120   :  { %v186_v34 = vmax.f32 %v182_v31, 0.0 }
 0x125   :  { %v183_v32 = vpop.f32.mrf.mxu1 }
 0x126   :  { %v184_v33 = vadd.f32 %v433_v30, %v183_v32 }
 0x128   :  { %v187_v35 = vmax.f32 %v184_v33, 0.0 }
 0x12a   :  { %v188_v36 = vpack.c.bf16 %v187_v35, %v186_v34 }
 0x12c   :  { %265 = vmatmul.bf16.vlgmr.msra.gmra.mxu2 %v188_v36 }
 0x1af   :  { %v266_v38 = vpop.f32.mrf.mxu2 }
 0x1b0   :  { %v267_v39 = vadd.f32 %v434_v37, %v266_v38 }
 0x1b2   :  { %v405_v40 = vmul.f32 -1.442695, %v267_v39 }
 0x1b4   :  { %435 = vpow2.f32 %v405_v40 }
 0x1b7   :  { %v268_v41 = vpop.f32.mrf.mxu2 }
 0x1b8   :  { %v269_v42 = vadd.f32 %v434_v37, %v268_v41 }
 0x1ba   :  { %v436_v43 = vpop.eup %435  ;;  %v406_v44 = vmul.f32 -1.442695, %v269_v42 }
 0x1bb   :  { %v277_v45 = vadd.f32 1.0, %v436_v43 }
 0x1bc   :  { %437 = vpow2.f32 %v406_v44 }
 0x1bd   :  { %439 = vrcp.f32 %v277_v45  ;;  %v290_v51 = vand.u32 2147483648, %v277_v45  ;;  %v288_v53 = vand.u32 2147483647, %v277_v45  ;;  %vm284_vm2 = vweird.f32 %v277_v45 }
 0x1bf   :  { %v291_v56 = vor.u32 1.1754944e-38, %v290_v51  ;;  %vm289_vm5 = vcmp.eq.f32.partialorder %v288_v53, 8.507059e+37 }
 0x1c2   :  { %v438_v46 = vpop.eup %437 }
 0x1c3   :  { %v440_v47 = vpop.eup %439  ;;  %v278_v48 = vadd.f32 1.0, %v438_v46 }
 0x1c4   :  { %v280_v49 = vmul.f32 %v440_v47, %v277_v45  ;;  %vm285_vm1 = vweird.f32 %v440_v47 }
 0x1c5   :  { %441 = vrcp.f32 %v278_v48  ;;  %vm286_vm3 = vmor %vm284_vm2, %vm285_vm1  ;;  %v305_v61 = vand.u32 2147483648, %v278_v48  ;;  %v303_v63 = vand.u32 2147483647, %v278_v48  ;;  %vm299_vm7 = vweird.f32 %v278_v48 }
 0x1c6   :  { %v281_v50 = vsub.f32 1.0, %v280_v49 }
 0x1c7   :  { %v306_v1 = vor.u32 1.1754944e-38, %v305_v61  ;;  %vm304_vm9 = vcmp.eq.f32.partialorder %v303_v63, 8.507059e+37 }
 0x1c8   :  { %v282_v52 = vmul.f32 %v440_v47, %v281_v50 }
 0x1ca   :  { %v283_v54 = vadd.f32 %v440_v47, %v282_v52 }
 0x1cb   :  { %v442_v55 = vpop.eup %441 }
 0x1cc   :  { %v295_v57 = vmul.f32 %v442_v55, %v278_v48  ;;  %v287_v58 = vsel %vm286_vm3, %v440_v47, %v283_v54  ;;  %vm300_vm6 = vweird.f32 %v442_v55 }
 0x1cd   :  { %v292_v59 = vsel %vm289_vm5, %v291_v56, %v287_v58  ;;  %vm301_vm8 = vmor %vm299_vm7, %vm300_vm6 }
 0x1ce   :  { %v296_v60 = vsub.f32 1.0, %v295_v57  ;;  %310 = vst.msk [vmem:[#allocation7] sm:$0xff] %vm309_vm4, %v292_v59 }
 0x1d0   :  { %v297_v62 = vmul.f32 %v442_v55, %v296_v60 }
 0x1d2   :  { %v298_v0 = vadd.f32 %v442_v55, %v297_v62 }
 0x1d4   :  { %v302_v2 = vsel %vm301_vm8, %v442_v55, %v298_v0 }
 0x1d5   :  { %v307_v3 = vsel %vm304_vm9, %v306_v1, %v302_v2 }
 0x1d6   :  { %311 = vst.msk [vmem:[#allocation7 + $0x8] sm:$0xff] %vm309_vm4, %v307_v3 }
 0x1d7   :  { %324 = dma.vmem_to_hbm [thread:$0]  %s317_s5, 256, %s319_s27, [#allocation4], %s522_s9, %s522_s9, %s523_s10  }
 0x1d8   :  { %519 = dma.done.wait [#allocation4], 256  }
 0x1d9   :  { %520 = vsyncadd [#allocation4], 4294967040 }
 0x1da   :  { %329 = vsyncpa [#allocation3], 1 }
 0x1db   :  { %330 = vsyncpa [#allocation6], 1 }
 0x1dc   :  { %331 = vsyncpa [#allocation4], 1 }

</bundles_post_ra>
